<compile_context>
chip_gen: v5e
topology: v5e:2x2
jax: 0.10.0
libtpu: 0.0.40
codegen_flags: <defaults>
</compile_context>

<pallas_src>
import functools

import jax
import jax.numpy as jnp
from jax import lax
from jax.experimental import pallas as pl
from jax.experimental.pallas import tpu as pltpu


# ----------------------------------------------------------------------------
# Fused kernel: BLS inference + FastGuidedFilter + clamp
# ----------------------------------------------------------------------------
def fused_kernel(x_ref, wf_ref, bf_ref, scale_ref, off_ref, wh_ref, bh_ref,
                 wp_ref, bp_ref, ly_ref, hx_ref, mbox_ref, invn_ref, uup_ref,
                 out_ref, *, s, n_elem, eps, C, HW):
    f32 = jnp.float32
    bf16 = jnp.bfloat16

    # ---------------- BLS (inference branch of BLS.forward) ----------------
    # One-pass standardization: sum and sum-of-squares in a single sweep.
    x = x_ref[...]                                            # (1, D) f32
    n = float(n_elem)
    sum_x = jnp.sum(x)
    sum_xx = jnp.sum(x * x)
    mean = sum_x * (1.0 / n)
    var = (sum_xx - n * mean * mean) * (1.0 / (n - 1.0))      # torch.std is unbiased
    # TODO(synk): reference has no epsilon here; constant input (var==0) -> NaN.
    h = ((x - mean) * lax.rsqrt(var)).astype(bf16)

    # Feature nodes: all N2 windows fused into one (1,D)@(D,128) bf16 matmul;
    # per-window (T1-min)/(max-min) is a precomputed scale/offset.
    y = jnp.dot(h, wf_ref[...], preferred_element_type=f32) + bf_ref[...]
    y = y * scale_ref[...] + off_ref[...]                     # (1,128); padded lanes == 0

    # Enhancement nodes (padded lanes carry bias -1e30 -> never win the max,
    # tanh saturates them to +/-1 and their predict-weight rows are zero).
    tt = jnp.dot(y.astype(bf16), wh_ref[...], preferred_element_type=f32) + bh_ref[...]
    inv_mx = pl.reciprocal(jnp.max(tt, axis=-1, keepdims=True), approx=True)  # EUP slot
    t2 = jnp.tanh(tt * (s * inv_mx))                          # (1, 128)

    # Predict layer on T3 = [y, t2]: K=256 per push, one push per channel,
    # single fused bias add.  map_lr (lx) never touches a VMEM scratch.
    yt = jnp.concatenate([y, t2], axis=1).astype(bf16)        # (1, 256)
    rows = [jnp.dot(yt, wp_ref[:, pl.ds(c * HW, HW)], preferred_element_type=f32)
            for c in range(C)]                                # static unroll, C == 3
    lx = jnp.concatenate(rows, axis=0) + bp_ref[...]          # (C, HW) == map_lr

    # ---------------- FastGuidedFilter (low-res stats, upsample, apply) ----
    ly = ly_ref[...]                                          # (C, HW)    x_lr
    hx = hx_ref[...]                                          # (C, HhWh)  high-res guide

    # Four box filters as ONE MXU matmul (kept f32: var/cov cancellation).
    stacked = jnp.concatenate([lx, ly, lx * ly, lx * lx], axis=0)      # (4C, HW)
    moments = (jnp.dot(stacked, mbox_ref[...], preferred_element_type=f32)
               * invn_ref[...])                                        # (4C, HW)
    mean_x = moments[0 * C:1 * C]
    mean_y = moments[1 * C:2 * C]
    cov_xy = moments[2 * C:3 * C] - mean_x * mean_y
    var_x = moments[3 * C:4 * C] - mean_x * mean_x
    A = cov_xy / (var_x + eps)            # exact divide: var_x ~ 0 + eps=1e-8
    b = mean_y - A * mean_x

    # Bilinear upsample of A and b in ONE matmul, then apply + clamp.
    Ab = jnp.concatenate([A, b], axis=0).astype(bf16)                  # (2C, HW)
    up = jnp.dot(Ab, uup_ref[...], preferred_element_type=f32)         # (2C, HhWh)
    out_ref[...] = jnp.clip(up[:C] * hx + up[C:], 0.0, 1.0)            # lane-dense store


# ----------------------------------------------------------------------------
# Host-side operator matrices (built once per geometry, cached)
# ----------------------------------------------------------------------------
def box_matrix(n, radius):
    i = jnp.arange(n)
    return (jnp.abs(i[:, None] - i[None, :]) <= radius).astype(jnp.float32)


def bilinear_matrix(out_size, in_size):
    # align_corners=False semantics (F.interpolate default)
    i = jnp.arange(out_size, dtype=jnp.float32)
    src = (i + 0.5) * (in_size / out_size) - 0.5
    i0 = jnp.floor(src)
    frac = src - i0
    i0c = jnp.clip(i0, 0, in_size - 1).astype(jnp.int32)
    i1c = jnp.clip(i0 + 1, 0, in_size - 1).astype(jnp.int32)
    u = jnp.zeros((out_size, in_size), jnp.float32)
    rows = jnp.arange(out_size)
    u = u.at[rows, i0c].add(1.0 - frac)
    u = u.at[rows, i1c].add(frac)
    return u


@functools.lru_cache(maxsize=None)
def make_filter_operators(H, W, Hh, Wh, radius):
    """Flat kron operators acting on row-major (H*W) row vectors.

    box(z) = z @ kron(boxh, boxw); upsample(z) = z @ kron(uh.T, uw.T).
    Computed once per (H, W, Hh, Wh, radius) and reused across calls.
    """
    boxh = box_matrix(H, radius)
    boxw = box_matrix(W, radius)
    mbox = jnp.kron(boxh, boxw)                               # (HW, HW) f32
    inv_n = 1.0 / (jnp.ones((1, H * W), jnp.float32) @ mbox)  # (1, HW) f32
    uh = bilinear_matrix(Hh, H)
    uw = bilinear_matrix(Wh, W)
    uup = jnp.kron(uh.T, uw.T).astype(jnp.bfloat16)           # (HW, HhWh) bf16
    return mbox, inv_n, uup


# ----------------------------------------------------------------------------
# Synthetic BLS parameters (inference-only; replaces generate_nodes training),
# zero-padded to 128 lanes, predict weights stacked to K=256 host-side.
# ----------------------------------------------------------------------------
def make_bls_params(key, D, N1=10, N2=10, N3=110, s=0.8, pad=128):
    F1, F2 = N1 * N2, N3
    assert F1 <= pad and F2 <= pad
    ks = jax.random.split(key, 6)

    # We: (N2, D+1, N1) fused to one (D+1, N1*N2) weight; bias row split off.
    We = jax.random.normal(ks[0], (N2, D + 1, N1), jnp.float32) * 0.1
    Wf = jnp.transpose(We, (1, 0, 2)).reshape(D + 1, F1)
    W_feat = (jnp.zeros((D, pad), jnp.float32).at[:, :F1].set(Wf[:D])
              .astype(jnp.bfloat16))
    b_feat = jnp.zeros((1, pad), jnp.float32).at[:, :F1].set(Wf[D])

    # ps = (min, max) per feature window -> scale/offset (padded lanes stay 0).
    ps_min = -jnp.abs(jax.random.normal(ks[1], (N2,), jnp.float32)) - 0.1
    ps_max = jnp.abs(jax.random.normal(ks[2], (N2,), jnp.float32)) + 0.1
    inv = 1.0 / (ps_max - ps_min)
    scale = jnp.zeros((1, pad), jnp.float32).at[:, :F1].set(jnp.repeat(inv, N1))
    offset = jnp.zeros((1, pad), jnp.float32).at[:, :F1].set(jnp.repeat(-ps_min * inv, N1))

    # Wh: (N1*N2+1, N3); padded enhancement lanes get -1e30 bias (max-safe).
    Wh_full = jax.random.normal(ks[3], (F1 + 1, F2), jnp.float32) * 0.1
    Wh = (jnp.zeros((pad, pad), jnp.float32).at[:F1, :F2].set(Wh_full[:F1])
          .astype(jnp.bfloat16))
    bh = jnp.full((1, pad), -1e30, jnp.float32).at[:, :F2].set(Wh_full[F1])

    # predict: nn.Linear(N1*N2+N3, D) -> out = T3 @ W.T + b.
    # Stack the y-part and t2-part rows into one (2*pad, D) K=256 weight.
    WpT = jax.random.normal(ks[4], (F1 + F2, D), jnp.float32) * 0.05
    b_pred = jax.random.normal(ks[5], (1, D), jnp.float32) * 0.01
    Wp = (jnp.zeros((2 * pad, D), jnp.float32)
          .at[:F1].set(WpT[:F1])
          .at[pad:pad + F2].set(WpT[F1:])
          .astype(jnp.bfloat16))

    return dict(s=s, W_feat=W_feat, b_feat=b_feat, scale=scale, offset=offset,
                Wh=Wh, bh=bh, Wp=Wp, b_pred=b_pred)


# ----------------------------------------------------------------------------
# BroadGuidedFilter_lr.forward
# ----------------------------------------------------------------------------
@functools.partial(jax.jit, static_argnames=("s", "eps"))
def _forward(x_lr, x_hr, bls, mbox, inv_n, uup, *, s, eps):
    B, C, H, W = x_lr.shape
    _, _, Hh, Whr = x_hr.shape
    HW, HhWh = H * W, Hh * Whr

    x_flat = x_lr.reshape(1, -1).astype(jnp.float32)          # BLS input (1, D)
    ly = x_lr.reshape(C, HW).astype(jnp.float32)              # low-res target
    hx = x_hr.reshape(C, HhWh).astype(jnp.float32)            # high-res guide
    bp = bls["b_pred"].reshape(C, HW)                         # per-channel bias

    args = (x_flat, bls["W_feat"], bls["b_feat"], bls["scale"], bls["offset"],
            bls["Wh"], bls["bh"], bls["Wp"], bp, ly, hx, mbox, inv_n, uup)

    out = pl.pallas_call(
        functools.partial(fused_kernel, s=s, n_elem=x_flat.shape[1], eps=eps,
                          C=C, HW=HW),
        out_shape=jax.ShapeDtypeStruct((C, HhWh), jnp.float32),
        in_specs=[pl.BlockSpec(memory_space=pltpu.MemorySpace.VMEM)
                  for _ in args],
        out_specs=pl.BlockSpec(memory_space=pltpu.MemorySpace.VMEM),
    )(*args)

    return out.reshape(1, C, Hh, Whr)                         # already clamped to [0, 1]


def broad_guided_filter_lr(x_lr, x_hr, params, radius=1, eps=1e-8):
    _, _, H, W = x_lr.shape
    _, _, Hh, Whr = x_hr.shape
    mbox, inv_n, uup = make_filter_operators(H, W, Hh, Whr, radius)  # cached
    bls = {k: v for k, v in params.items() if k != "s"}
    return _forward(x_lr, x_hr, bls, mbox, inv_n, uup,
                    s=float(params["s"]), eps=float(eps))


if __name__ == "__main__":
    key = jax.random.PRNGKey(0)
    k_param, k_lr, k_hr = jax.random.split(key, 3)

    C = 3
    H_LR, W_LR = 8, 16
    H_HR, W_HR = 16, 32
    x_lr = jax.random.uniform(k_lr, (1, C, H_LR, W_LR), jnp.float32)
    x_hr = jax.random.uniform(k_hr, (1, C, H_HR, W_HR), jnp.float32)

    D = C * H_LR * W_LR
    params = make_bls_params(k_param, D, N1=10, N2=10, N3=110, s=0.8)

    out = broad_guided_filter_lr(x_lr, x_hr, params, radius=1, eps=1e-8)
    jax.block_until_ready(out)
    assert out.shape == (1, C, H_HR, W_HR)
    assert bool(jnp.all(jnp.isfinite(out)))
    assert bool(jnp.all((out >= 0.0) & (out <= 1.0)))
    print("KERNEL_OK")
</pallas_src>

<mosaic_0001>
module attributes {stable_mosaic.version = 11 : i64} {
  func.func @fused_kernel(%arg0: memref<1x384xf32, #tpu.memory_space<vmem>>, %arg1: memref<384x128xbf16, #tpu.memory_space<vmem>>, %arg2: memref<1x128xf32, #tpu.memory_space<vmem>>, %arg3: memref<1x128xf32, #tpu.memory_space<vmem>>, %arg4: memref<1x128xf32, #tpu.memory_space<vmem>>, %arg5: memref<128x128xbf16, #tpu.memory_space<vmem>>, %arg6: memref<1x128xf32, #tpu.memory_space<vmem>>, %arg7: memref<256x384xbf16, #tpu.memory_space<vmem>>, %arg8: memref<3x128xf32, #tpu.memory_space<vmem>>, %arg9: memref<3x128xf32, #tpu.memory_space<vmem>>, %arg10: memref<3x512xf32, #tpu.memory_space<vmem>>, %arg11: memref<128x128xf32, #tpu.memory_space<vmem>>, %arg12: memref<1x128xf32, #tpu.memory_space<vmem>>, %arg13: memref<128x512xbf16, #tpu.memory_space<vmem>>, %arg14: memref<3x512xf32, #tpu.memory_space<vmem>>) attributes {dimension_semantics = [], scalar_prefetch = 0 : i64, scratch_operands = 0 : i64, tpu.core_type = #tpu.core_type<tc>} {
    %c0 = arith.constant 0 : index
    %c0_0 = arith.constant 0 : index
    %0 = vector.load %arg0[%c0, %c0_0] : memref<1x384xf32, #tpu.memory_space<vmem>>, vector<1x384xf32>
    %1 = vector.shape_cast %0 : vector<1x384xf32> to vector<1x1x384xf32>
    %cst = arith.constant dense<0.000000e+00> : vector<1xf32>
    %2 = vector.multi_reduction <add>, %1, %cst [1, 2] : vector<1x1x384xf32> to vector<1xf32>
    %3 = vector.shape_cast %2 : vector<1xf32> to vector<1x1x1xf32>
    %4 = vector.extract %3[0, 0, 0] : f32 from vector<1x1x1xf32>
    %5 = arith.mulf %0, %0 : vector<1x384xf32>
    %6 = vector.shape_cast %5 : vector<1x384xf32> to vector<1x1x384xf32>
    %cst_1 = arith.constant dense<0.000000e+00> : vector<1xf32>
    %7 = vector.multi_reduction <add>, %6, %cst_1 [1, 2] : vector<1x1x384xf32> to vector<1xf32>
    %8 = vector.shape_cast %7 : vector<1xf32> to vector<1x1x1xf32>
    %9 = vector.extract %8[0, 0, 0] : f32 from vector<1x1x1xf32>
    %cst_2 = arith.constant 0.00260416674 : f32
    %10 = arith.mulf %4, %cst_2 : f32
    %cst_3 = arith.constant 3.840000e+02 : f32
    %11 = arith.mulf %cst_3, %10 : f32
    %12 = arith.mulf %11, %10 : f32
    %13 = arith.subf %9, %12 : f32
    %cst_4 = arith.constant 0.0026109661 : f32
    %14 = arith.mulf %13, %cst_4 : f32
    %15 = vector.broadcast %10 : f32 to vector<1x384xf32>
    %16 = arith.subf %0, %15 : vector<1x384xf32>
    %17 = math.rsqrt %14 : f32
    %18 = vector.broadcast %17 : f32 to vector<1x384xf32>
    %19 = arith.mulf %16, %18 : vector<1x384xf32>
    %20 = arith.truncf %19 : vector<1x384xf32> to vector<1x384xbf16>
    %c0_5 = arith.constant 0 : index
    %c0_6 = arith.constant 0 : index
    %21 = vector.load %arg1[%c0_5, %c0_6] : memref<384x128xbf16, #tpu.memory_space<vmem>>, vector<384x128xbf16>
    %cst_7 = arith.constant dense<0.000000e+00> : vector<1x128xf32>
    %22 = tpu.matmul %20, %21, %cst_7 {dimension_numbers = #tpu.dot_dimension_numbers<[1], [0], [0], [1], [0, 0, 1, 1], [], []>} : vector<1x384xbf16>, vector<384x128xbf16>, vector<1x128xf32> -> vector<1x128xf32>
    %c0_8 = arith.constant 0 : index
    %c0_9 = arith.constant 0 : index
    %23 = vector.load %arg2[%c0_8, %c0_9] : memref<1x128xf32, #tpu.memory_space<vmem>>, vector<1x128xf32>
    %24 = arith.addf %22, %23 : vector<1x128xf32>
    %c0_10 = arith.constant 0 : index
    %c0_11 = arith.constant 0 : index
    %25 = vector.load %arg3[%c0_10, %c0_11] : memref<1x128xf32, #tpu.memory_space<vmem>>, vector<1x128xf32>
    %26 = arith.mulf %24, %25 : vector<1x128xf32>
    %c0_12 = arith.constant 0 : index
    %c0_13 = arith.constant 0 : index
    %27 = vector.load %arg4[%c0_12, %c0_13] : memref<1x128xf32, #tpu.memory_space<vmem>>, vector<1x128xf32>
    %28 = arith.addf %26, %27 : vector<1x128xf32>
    %29 = arith.truncf %28 : vector<1x128xf32> to vector<1x128xbf16>
    %c0_14 = arith.constant 0 : index
    %c0_15 = arith.constant 0 : index
    %30 = vector.load %arg5[%c0_14, %c0_15] : memref<128x128xbf16, #tpu.memory_space<vmem>>, vector<128x128xbf16>
    %cst_16 = arith.constant dense<0.000000e+00> : vector<1x128xf32>
    %31 = tpu.matmul %29, %30, %cst_16 {dimension_numbers = #tpu.dot_dimension_numbers<[1], [0], [0], [1], [0, 0, 1, 1], [], []>} : vector<1x128xbf16>, vector<128x128xbf16>, vector<1x128xf32> -> vector<1x128xf32>
    %c0_17 = arith.constant 0 : index
    %c0_18 = arith.constant 0 : index
    %32 = vector.load %arg6[%c0_17, %c0_18] : memref<1x128xf32, #tpu.memory_space<vmem>>, vector<1x128xf32>
    %33 = arith.addf %31, %32 : vector<1x128xf32>
    %cst_19 = arith.constant dense<0xFF800000> : vector<1xf32>
    %34 = vector.multi_reduction <maximumf>, %33, %cst_19 [1] : vector<1x128xf32> to vector<1xf32>
    %35 = vector.shape_cast %34 : vector<1xf32> to vector<1x1xf32>
    %36 = tpu.reciprocal %35 {approx = true} : vector<1x1xf32> -> vector<1x1xf32>
    %cst_20 = arith.constant 8.000000e-01 : f32
    %37 = vector.broadcast %cst_20 : f32 to vector<1x1xf32>
    %38 = arith.mulf %37, %36 : vector<1x1xf32>
    %39 = vector.broadcast %38 : vector<1x1xf32> to vector<1x128xf32>
    %40 = arith.mulf %33, %39 : vector<1x128xf32>
    %41 = math.tanh %40 : vector<1x128xf32>
    %42 = tpu.concatenate %28, %41 in 1 : vector<1x128xf32>, vector<1x128xf32> -> vector<1x256xf32>
    %43 = arith.truncf %42 : vector<1x256xf32> to vector<1x256xbf16>
    %c0_21 = arith.constant 0 : index
    %c0_22 = arith.constant 0 : index
    %44 = vector.load %arg7[%c0_21, %c0_22] : memref<256x384xbf16, #tpu.memory_space<vmem>>, vector<256x128xbf16>
    %cst_23 = arith.constant dense<0.000000e+00> : vector<1x128xf32>
    %45 = tpu.matmul %43, %44, %cst_23 {dimension_numbers = #tpu.dot_dimension_numbers<[1], [0], [0], [1], [0, 0, 1, 1], [], []>} : vector<1x256xbf16>, vector<256x128xbf16>, vector<1x128xf32> -> vector<1x128xf32>
    %c0_24 = arith.constant 0 : index
    %c128 = arith.constant 128 : index
    %46 = vector.load %arg7[%c0_24, %c128] : memref<256x384xbf16, #tpu.memory_space<vmem>>, vector<256x128xbf16>
    %cst_25 = arith.constant dense<0.000000e+00> : vector<1x128xf32>
    %47 = tpu.matmul %43, %46, %cst_25 {dimension_numbers = #tpu.dot_dimension_numbers<[1], [0], [0], [1], [0, 0, 1, 1], [], []>} : vector<1x256xbf16>, vector<256x128xbf16>, vector<1x128xf32> -> vector<1x128xf32>
    %c0_26 = arith.constant 0 : index
    %c256 = arith.constant 256 : index
    %48 = vector.load %arg7[%c0_26, %c256] : memref<256x384xbf16, #tpu.memory_space<vmem>>, vector<256x128xbf16>
    %cst_27 = arith.constant dense<0.000000e+00> : vector<1x128xf32>
    %49 = tpu.matmul %43, %48, %cst_27 {dimension_numbers = #tpu.dot_dimension_numbers<[1], [0], [0], [1], [0, 0, 1, 1], [], []>} : vector<1x256xbf16>, vector<256x128xbf16>, vector<1x128xf32> -> vector<1x128xf32>
    %50 = tpu.concatenate %45, %47, %49 in 0 : vector<1x128xf32>, vector<1x128xf32>, vector<1x128xf32> -> vector<3x128xf32>
    %c0_28 = arith.constant 0 : index
    %c0_29 = arith.constant 0 : index
    %51 = vector.load %arg8[%c0_28, %c0_29] : memref<3x128xf32, #tpu.memory_space<vmem>>, vector<3x128xf32>
    %52 = arith.addf %50, %51 : vector<3x128xf32>
    %c0_30 = arith.constant 0 : index
    %c0_31 = arith.constant 0 : index
    %53 = vector.load %arg9[%c0_30, %c0_31] : memref<3x128xf32, #tpu.memory_space<vmem>>, vector<3x128xf32>
    %c0_32 = arith.constant 0 : index
    %c0_33 = arith.constant 0 : index
    %54 = vector.load %arg10[%c0_32, %c0_33] : memref<3x512xf32, #tpu.memory_space<vmem>>, vector<3x512xf32>
    %55 = arith.mulf %52, %53 : vector<3x128xf32>
    %56 = arith.mulf %52, %52 : vector<3x128xf32>
    %57 = tpu.concatenate %52, %53, %55, %56 in 0 : vector<3x128xf32>, vector<3x128xf32>, vector<3x128xf32>, vector<3x128xf32> -> vector<12x128xf32>
    %c0_34 = arith.constant 0 : index
    %c0_35 = arith.constant 0 : index
    %58 = vector.load %arg11[%c0_34, %c0_35] : memref<128x128xf32, #tpu.memory_space<vmem>>, vector<128x128xf32>
    %cst_36 = arith.constant dense<0.000000e+00> : vector<12x128xf32>
    %59 = tpu.matmul %57, %58, %cst_36 {dimension_numbers = #tpu.dot_dimension_numbers<[1], [0], [0], [1], [0, 0, 1, 1], [], []>} : vector<12x128xf32>, vector<128x128xf32>, vector<12x128xf32> -> vector<12x128xf32>
    %c0_37 = arith.constant 0 : index
    %c0_38 = arith.constant 0 : index
    %60 = vector.load %arg12[%c0_37, %c0_38] : memref<1x128xf32, #tpu.memory_space<vmem>>, vector<1x128xf32>
    %61 = vector.broadcast %60 : vector<1x128xf32> to vector<12x128xf32>
    %62 = arith.mulf %59, %61 : vector<12x128xf32>
    %63 = vector.extract_strided_slice %62 {offsets = [0, 0], sizes = [3, 128], strides = [1, 1]} : vector<12x128xf32> to vector<3x128xf32>
    %64 = vector.extract_strided_slice %62 {offsets = [3, 0], sizes = [3, 128], strides = [1, 1]} : vector<12x128xf32> to vector<3x128xf32>
    %65 = vector.extract_strided_slice %62 {offsets = [6, 0], sizes = [3, 128], strides = [1, 1]} : vector<12x128xf32> to vector<3x128xf32>
    %66 = arith.mulf %63, %64 : vector<3x128xf32>
    %67 = arith.subf %65, %66 : vector<3x128xf32>
    %68 = vector.extract_strided_slice %62 {offsets = [9, 0], sizes = [3, 128], strides = [1, 1]} : vector<12x128xf32> to vector<3x128xf32>
    %69 = arith.mulf %63, %63 : vector<3x128xf32>
    %70 = arith.subf %68, %69 : vector<3x128xf32>
    %cst_39 = arith.constant 9.99999993E-9 : f32
    %71 = vector.broadcast %cst_39 : f32 to vector<3x128xf32>
    %72 = arith.addf %70, %71 : vector<3x128xf32>
    %73 = arith.divf %67, %72 : vector<3x128xf32>
    %74 = arith.mulf %73, %63 : vector<3x128xf32>
    %75 = arith.subf %64, %74 : vector<3x128xf32>
    %76 = tpu.concatenate %73, %75 in 0 : vector<3x128xf32>, vector<3x128xf32> -> vector<6x128xf32>
    %77 = arith.truncf %76 : vector<6x128xf32> to vector<6x128xbf16>
    %c0_40 = arith.constant 0 : index
    %c0_41 = arith.constant 0 : index
    %78 = vector.load %arg13[%c0_40, %c0_41] : memref<128x512xbf16, #tpu.memory_space<vmem>>, vector<128x512xbf16>
    %cst_42 = arith.constant dense<0.000000e+00> : vector<6x512xf32>
    %79 = tpu.matmul %77, %78, %cst_42 {dimension_numbers = #tpu.dot_dimension_numbers<[1], [0], [0], [1], [0, 0, 1, 1], [], []>} : vector<6x128xbf16>, vector<128x512xbf16>, vector<6x512xf32> -> vector<6x512xf32>
    %80 = vector.extract_strided_slice %79 {offsets = [0, 0], sizes = [3, 512], strides = [1, 1]} : vector<6x512xf32> to vector<3x512xf32>
    %81 = arith.mulf %80, %54 : vector<3x512xf32>
    %82 = vector.extract_strided_slice %79 {offsets = [3, 0], sizes = [3, 512], strides = [1, 1]} : vector<6x512xf32> to vector<3x512xf32>
    %83 = arith.addf %81, %82 : vector<3x512xf32>
    %cst_43 = arith.constant 0.000000e+00 : f32
    %cst_44 = arith.constant 1.000000e+00 : f32
    %84 = vector.broadcast %cst_43 : f32 to vector<3x512xf32>
    %85 = arith.maximumf %84, %83 : vector<3x512xf32>
    %86 = vector.broadcast %cst_44 : f32 to vector<3x512xf32>
    %87 = arith.minimumf %86, %85 : vector<3x512xf32>
    %c0_45 = arith.constant 0 : index
    %c0_46 = arith.constant 0 : index
    %88 = vector.load %arg14[%c0_45, %c0_46] : memref<3x512xf32, #tpu.memory_space<vmem>>, vector<3x512xf32>
    tpu.vector_store %arg14[%c0_45, %c0_46], %87 {strides = array<i32>} : memref<3x512xf32, #tpu.memory_space<vmem>>, vector<3x512xf32>,
    return
  }
}

</mosaic_0001>

<bundles_post_ra>
// kernel: _forward.1
= control target key start
LH: loop header
LB: loop body
LE: loop exit
PB: predicated region body
PF: predicated region fallthrough
CT: control target
= control target key end

     0   :  { %19 = vsyncpa [#allocation3], 0  ;;  %s2504_s0 = inlined_call_operand.vmem [shape: f32[1,384], index: 0, kind: input, shape index: {}]   ;;  %s2505_s1 = inlined_call_operand.hbm [shape: bf16[384,128], index: 1, kind: input, shape index: {}]   ;;  %s2506_s2 = inlined_call_operand.hbm [shape: f32[1,128], index: 2, kind: input, shape index: {}]   ;;  %s2507_s3 = inlined_call_operand.hbm [shape: f32[1,128], index: 3, kind: input, shape index: {}]   ;;  %s2508_s4 = inlined_call_operand.hbm [shape: f32[1,128], index: 4, kind: input, shape index: {}]   ;;  %s2509_s5 = inlined_call_operand.vmem [shape: bf16[128,128], index: 5, kind: input, shape index: {}]   ;;  %s2510_s6 = inlined_call_operand.hbm [shape: f32[1,128], index: 6, kind: input, shape index: {}]   ;;  %s2511_s7 = inlined_call_operand.hbm [shape: bf16[256,384], index: 7, kind: input, shape index: {}]   ;;  %s2512_s8 = inlined_call_operand.vmem [shape: f32[3,128], index: 8, kind: input, shape index: {}]   ;;  %s2513_s9 = inlined_call_operand.vmem [shape: f32[3,128], index: 9, kind: input, shape index: {}]   ;;  %s2514_s10 = inlined_call_operand.vmem [shape: f32[3,512], index: 10, kind: input, shape index: {}]   ;;  %s2515_s11 = inlined_call_operand.hbm [shape: f32[128,128], index: 11, kind: input, shape index: {}]   ;;  %s2516_s12 = inlined_call_operand.hbm [shape: f32[1,128], index: 12, kind: input, shape index: {}]   ;;  %s2517_s13 = inlined_call_operand.hbm [shape: bf16[128,512], index: 13, kind: input, shape index: {}]   ;;  %s2518_s14 = inlined_call_operand.vmem [shape: f32[3,512], index: 14, kind: output, shape index: {}]  }
   0x1   :  { %20 = vsyncpa [#allocation5], 0 }
   0x2   :  { %21 = vsyncpa [#allocation8], 0 }
   0x3   :  { %22 = vsyncpa [#allocation11], 0  ;;  %s44_s15 = sshll.u32 %s2506_s2, 4  ;;  %s45_s15 = int_to_ptr.hbm [resolvable:$true] %s44_s15 }
   0x4   :  { %23 = vsyncpa [#allocation14], 0  ;;  %s2292_s16 = smov [#allocation4]   ;;  %s66_s20 = sshll.u32 %s2508_s4, 4  ;;  %s67_s20 = int_to_ptr.hbm [resolvable:$true] %s66_s20 }
   0x5   :  { %s46_s17 = sshll.u32 %s2292_s16, 4  ;;  %s2293_s21 = smov [#allocation7]   ;;  %s47_s17 = int_to_ptr.vmem [resolvable:$true] %s46_s17 }
   0x6   :  { %49 = dma.hbm_to_vmem [thread:$0]  %s45_s15, 16, %s47_s17, [#allocation5]  }
   0x7   :  { %s68_s22 = sshll.u32 %s2293_s21, 4  ;;  %s89_s25 = sshll.u32 %s2511_s7, 4  ;;  %s69_s22 = int_to_ptr.vmem [resolvable:$true] %s68_s22  ;;  %s90_s25 = int_to_ptr.hbm [resolvable:$true] %s89_s25 }
   0x8   :  { %71 = dma.hbm_to_vmem [thread:$0]  %s67_s20, 16, %s69_s22, [#allocation8]  }
   0x9   :  { %s2294_s2 = smov [#allocation10]   ;;  %s122_s29 = sshll.u32 %s2516_s12, 4  ;;  %s123_s29 = int_to_ptr.hbm [resolvable:$true] %s122_s29 }
   0xa   :  { %s91_s26 = sshll.u32 %s2294_s2, 4  ;;  %s2295_s30 = smov 192   ;;  %s92_s26 = int_to_ptr.vmem [resolvable:$true] %s91_s26 }
   0xb   :  { %s2296_s4 = smov 12   ;;  %s2297_s15 = smov [#allocation13]  }
   0xc   :  { %97 = dma.hbm_to_vmem [thread:$0]  %s90_s25, 6144, %s92_s26, [#allocation11], %s2295_s30, %s2295_s30, %s2296_s4  }
   0xd   :  { %s124_s16 = sshll.u32 %s2297_s15, 4  ;;  %s30_s7 = sshll.u32 %s2505_s1, 4  ;;  %s125_s16 = int_to_ptr.vmem [resolvable:$true] %s124_s16  ;;  %s31_s7 = int_to_ptr.hbm [resolvable:$true] %s30_s7 }
   0xe   :  { %127 = dma.hbm_to_vmem [thread:$0]  %s123_s29, 16, %s125_s16, [#allocation14]  }
   0xf   :  { %s2298_s19 = smov [#allocation2]   ;;  %s55_s12 = sshll.u32 %s2507_s3, 4  ;;  %s56_s12 = int_to_ptr.hbm [resolvable:$true] %s55_s12 }
  0x10   :  { %s32_s20 = sshll.u32 %s2298_s19, 4  ;;  %s2299_s23 = smov 64   ;;  %s33_s20 = int_to_ptr.vmem [resolvable:$true] %s32_s20 }
  0x11   :  { %s2300_s24 = smov 4   ;;  %s2301_s25 = smov [#allocation6]  }
  0x12   :  { %38 = dma.hbm_to_vmem [thread:$0]  %s31_s7, 3072, %s33_s20, [#allocation3], %s2299_s23, %s2299_s23, %s2300_s24  }
  0x13   :  { %s57_s2 = sshll.u32 %s2301_s25, 4  ;;  %s79_s1 = sshll.u32 %s2510_s6, 4  ;;  %s58_s2 = int_to_ptr.vmem [resolvable:$true] %s57_s2  ;;  %s80_s1 = int_to_ptr.hbm [resolvable:$true] %s79_s1 }
  0x14   :  { %60 = dma.hbm_to_vmem [thread:$0]  %s56_s12, 16, %s58_s2, [#allocation5]  }
  0x15   :  { %s108_s30 = sshll.u32 %s2515_s11, 4  ;;  %s2302_s4 = smov [#allocation9]   ;;  %s109_s30 = int_to_ptr.hbm [resolvable:$true] %s108_s30 }
  0x16   :  { %s81_s15 = sshll.u32 %s2302_s4, 4  ;;  %s2303_s3 = smov [#allocation12]   ;;  %s82_s15 = int_to_ptr.vmem [resolvable:$true] %s81_s15 }
  0x17   :  { %84 = dma.hbm_to_vmem [thread:$0]  %s80_s1, 16, %s82_s15, [#allocation8]  }
  0x18   :  { %s110_s16 = sshll.u32 %s2303_s3, 4  ;;  %s2304_s17 = smov 128   ;;  %s111_s16 = int_to_ptr.vmem [resolvable:$true] %s110_s16 }
  0x19   :  { %s2305_s18 = smov 8   ;;  %s132_s19 = sshll.u32 %s2517_s13, 4  ;;  %s133_s19 = int_to_ptr.hbm [resolvable:$true] %s132_s19 }
  0x1a   :  { %116 = dma.hbm_to_vmem [thread:$0]  %s109_s30, 2048, %s111_s16, [#allocation11], %s2304_s17, %s2304_s17, %s2305_s18  }
  0x1b   :  { %s2306_s20 = smov [#allocation15]   ;;  %s2307_s11 = smov 256  }
  0x1c   :  { %s134_s21 = sshll.u32 %s2306_s20, 4  ;;  %s2308_s22 = smov 16   ;;  %s135_s21 = int_to_ptr.vmem [resolvable:$true] %s134_s21 }
  0x1d   :  { %140 = dma.hbm_to_vmem [thread:$0]  %s133_s19, 4096, %s135_s21, [#allocation14], %s2307_s11, %s2307_s11, %s2308_s22  }
  0x1e   :  { %2282 = dma.done.wait [#allocation3], 3072  }
  0x1f   :  { %2283 = vsyncadd [#allocation3], 4294964224 }
  0x20   :  { %2284 = dma.done.wait [#allocation5], 32  }
  0x21   :  { %2285 = vsyncadd [#allocation5], 4294967264 }
  0x22   :  { %2286 = dma.done.wait [#allocation8], 32  }
  0x23   :  { %2287 = vsyncadd [#allocation8], 4294967264 }
  0x24   :  { %2288 = dma.done.wait [#allocation11], 8192  }
  0x25   :  { %2289 = vsyncadd [#allocation11], 4294959104 }
  0x26   :  { %2290 = dma.done.wait [#allocation14], 4112  }
  0x27   :  { %2291 = vsyncadd [#allocation14], 4294963184  ;;  %v2414_v0 = vld [vmem:[%s2504_s0] sm:$0x7]  ;;  %vm185_vm0 = vcmask 1040384   ;;  %v1928_v35 = vld [vmem:[#allocation2 + $0x30] sm:$0xff] }
  0x28   :  { %v179_v1 = vperm.slane %v2414_v0, 0  ;;  %v180_v2 = vperm.slane %v2414_v0, 1  ;;  %v181_v3 = vperm.slane %v2414_v0, 2  ;;  %v200_v4 = vmul.f32 %v2414_v0, %v2414_v0  ;;  %v1929_v32 = vld [vmem:[#allocation2 + $0x38] sm:$0xff]  ;;  %v1936_v36 = vld [vmem:[#allocation2 + $0x70] sm:$0xff]  ;;  %v1927_v38 = vld [vmem:[#allocation2 + $0x28] sm:$0xff] }
  0x29   :  { %v1937_v33 = vld [vmem:[#allocation2 + $0x78] sm:$0xff]  ;;  %446 = vmatpush.bf16.msra.mxu0 %v1929_v32  ;;  %v1944_v37 = vld [vmem:[#allocation2 + $0xb0] sm:$0xff]  ;;  %v1935_v39 = vld [vmem:[#allocation2 + $0x68] sm:$0xff]  ;;  %vm1045_vm4 = vcmask 1041408   ;;  %vm1063_vm5 = vcmask 1042432   ;;  %vm1065_vm6 = vcmask 1045504  }
  0x2a   :  { %v186_v5 = vsel %vm185_vm0, %v179_v1, 0.0  ;;  %v187_v6 = vsel %vm185_vm0, %v180_v2, 0.0  ;;  %v189_v7 = vsel %vm185_vm0, %v181_v3, 0.0  ;;  %v202_v8 = vperm.slane %v200_v4, 0  ;;  %v1945_v34 = vld [vmem:[#allocation2 + $0xb8] sm:$0xff]  ;;  %459 = vmatpush.bf16.msra.mxu1 %v1937_v33  ;;  %v1943_v40 = vld [vmem:[#allocation2 + $0xa8] sm:$0xff] }
  0x2b   :  { %v188_v9 = vadd.f32 %v187_v6, %v186_v5  ;;  %v203_v10 = vperm.slane %v200_v4, 1  ;;  %v204_v11 = vperm.slane %v200_v4, 2  ;;  %472 = vmatpush.bf16.msra.mxu2 %v1945_v34  ;;  %v1926_v41 = vld [vmem:[#allocation2 + $0x20] sm:$0xff]  ;;  %v1925_v45 = vld [vmem:[#allocation2 + $0x18] sm:$0xff]  ;;  %v1924_v48 = vld [vmem:[#allocation2 + $0x10] sm:$0xff]  ;;  %vm1153_vm11 = vcmask 1044480  }
  0x2c   :  { %v208_v12 = vsel %vm185_vm0, %v202_v8, 0.0  ;;  %v1934_v42 = vld [vmem:[#allocation2 + $0x60] sm:$0xff]  ;;  %v1933_v46 = vld [vmem:[#allocation2 + $0x58] sm:$0xff]  ;;  %v1932_v49 = vld [vmem:[#allocation2 + $0x50] sm:$0xff]  ;;  %vm1458_vm12 = vcmask 1043456  }
  0x2d   :  { %v190_v13 = vadd.f32 %v189_v7, %v188_v9  ;;  %v209_v14 = vsel %vm185_vm0, %v203_v10, 0.0  ;;  %v211_v16 = vsel %vm185_vm0, %v204_v11, 0.0  ;;  %447 = vmatpush.bf16.msra.mxu0 %v1928_v35  ;;  %v1942_v43 = vld [vmem:[#allocation2 + $0xa0] sm:$0xff]  ;;  %v1941_v47 = vld [vmem:[#allocation2 + $0x98] sm:$0xff]  ;;  %v1940_v50 = vld [vmem:[#allocation2 + $0x90] sm:$0xff] }
  0x2e   :  { %v210_v15 = vadd.f32 %v209_v14, %v208_v12  ;;  %460 = vmatpush.bf16.msra.mxu1 %v1936_v36  ;;  %v1923_v58 = vld [vmem:[#allocation2 + $0x8] sm:$0xff]  ;;  %v1922_v61 = vld [vmem:[#allocation2] sm:$0xff]  ;;  %v1632_v1 = vld [vmem:[#allocation10 + $0xa8] sm:$0xf] }
  0x2f   :  { %191 = vadd.xlane.f32.xlu0 %v190_v13  ;;  %473 = vmatpush.bf16.msra.mxu2 %v1944_v37  ;;  %v1931_v59 = vld [vmem:[#allocation2 + $0x48] sm:$0xff]  ;;  %v1930_v62 = vld [vmem:[#allocation2 + $0x40] sm:$0xff]  ;;  %v1961_v2 = vld [vmem:[#allocation10 + $0xb0] sm:$0xf0] }
  0x30   :  { %v212_v17 = vadd.f32 %v211_v16, %v210_v15  ;;  %v1939_v60 = vld [vmem:[#allocation2 + $0x88] sm:$0xff]  ;;  %v1938_v63 = vld [vmem:[#allocation2 + $0x80] sm:$0xff]  ;;  %v1628_v3 = vld [vmem:[#allocation10 + $0x90] sm:$0xf]  ;;  %v1633_v4 = vor.u32 %v1961_v2, %v1632_v1 }
  0x31   :  { %448 = vmatpush.bf16.msra.mxu0 %v1927_v38  ;;  %v1960_v5 = vld [vmem:[#allocation10 + $0x98] sm:$0xf0]  ;;  %v1953_v6 = vld [vmem:[%s2509_s5 + $0x38] sm:$0xff]  ;;  %v1624_v8 = vld [vmem:[#allocation10 + $0x78] sm:$0xf] }
  0x32   :  { %461 = vmatpush.bf16.msra.mxu1 %v1935_v39  ;;  %v1629_v7 = vor.u32 %v1960_v5, %v1628_v3  ;;  %v1696_v9 = vld [vmem:[#allocation10 + $0xac] sm:$0xf]  ;;  %v1977_v10 = vld [vmem:[#allocation10 + $0xb4] sm:$0xf0]  ;;  %v1959_v11 = vld [vmem:[#allocation10 + $0x80] sm:$0xf0]  ;;  %555 = vmatpush.bf16.msra.mxu3 %v1953_v6 }
  0x33   :  { %474 = vmatpush.bf16.msra.mxu2 %v1943_v40  ;;  %v1697_v12 = vor.u32 %v1977_v10, %v1696_v9  ;;  %v1952_v13 = vld [vmem:[%s2509_s5 + $0x30] sm:$0xff]  ;;  %v1692_v14 = vld [vmem:[#allocation10 + $0x94] sm:$0xf]  ;;  %v1612_v32 = vld [vmem:[#allocation10 + $0x30] sm:$0xf] }
  0x34   :  { %v1976_v15 = vld [vmem:[#allocation10 + $0x9c] sm:$0xf0]  ;;  %v1956_v33 = vld [vmem:[#allocation10 + $0x38] sm:$0xf0]  ;;  %v1608_v36 = vld [vmem:[#allocation10 + $0x18] sm:$0xf] }
  0x35   :  { %449 = vmatpush.bf16.msra.mxu0 %v1926_v41  ;;  %v1693_v16 = vor.u32 %v1976_v15, %v1692_v14  ;;  %v1613_v34 = vor.u32 %v1956_v33, %v1612_v32  ;;  %v1955_v37 = vld [vmem:[#allocation10 + $0x20] sm:$0xf0]  ;;  %v1672_v1 = vld [vmem:[#allocation10 + $0x1c] sm:$0xf]  ;;  %v1971_v2 = vld [vmem:[#allocation10 + $0x24] sm:$0xf0] }
  0x36   :  { %462 = vmatpush.bf16.msra.mxu1 %v1934_v42  ;;  %556 = vmatpush.bf16.msra.mxu3 %v1952_v13  ;;  %v1609_v39 = vor.u32 %v1955_v37, %v1608_v36  ;;  %v1604_v42 = vld [vmem:[#allocation10] sm:$0xf]  ;;  %v1673_v5 = vor.u32 %v1971_v2, %v1672_v1  ;;  %v1991_v6 = vld [vmem:[#allocation10 + $0x88] sm:$0xf0]  ;;  %v1970_v9 = vld [vmem:[#allocation10 + $0xc] sm:$0xf0] }
  0x37   :  { %213 = vadd.xlane.f32.xlu0 %v212_v17  ;;  %475 = vmatpush.bf16.msra.mxu2 %v1942_v43  ;;  %v1625_v17 = vor.u32 %v1959_v11, %v1624_v8  ;;  %v1954_v43 = vld [vmem:[#allocation10 + $0x8] sm:$0xf0]  ;;  %v1752_v3 = vld [vmem:[#allocation10 + $0x80] sm:$0xf]  ;;  %v1668_v8 = vld [vmem:[#allocation10 + $0x4] sm:$0xf] }
  0x38   :  { %v1946_v10 = vld [vmem:[%s2509_s5] sm:$0xff]  ;;  %v1669_v11 = vor.u32 %v1970_v9, %v1668_v8  ;;  %v485_v33 = vld [vmem:[#allocation6] sm:$0x1]  ;;  %v487_v37 = vld [vmem:[#allocation7] sm:$0x1] }
  0x39   :  { %450 = vmatpush.bf16.msra.mxu0 %v1925_v45  ;;  %v1990_v13 = vld [vmem:[#allocation10 + $0x70] sm:$0xf0]  ;;  %v1744_v15 = vld [vmem:[#allocation10 + $0x50] sm:$0xf]  ;;  %v1648_v1 = vld [vmem:[#allocation10 + $0x108] sm:$0xf] }
  0x3a   :  { %463 = vmatpush.bf16.msra.mxu1 %v1933_v46  ;;  %v1965_v2 = vld [vmem:[#allocation10 + $0x110] sm:$0xf0]  ;;  %v1644_v8 = vld [vmem:[#allocation10 + $0xf0] sm:$0xf]  ;;  %v1964_v9 = vld [vmem:[#allocation10 + $0xf8] sm:$0xf0] }
  0x3b   :  { %476 = vmatpush.bf16.msra.mxu2 %v1941_v47  ;;  %v1605_v47 = vor.u32 %v1954_v43, %v1604_v42  ;;  %v1664_v42 = vld [vmem:[#allocation10 + $0x168] sm:$0xf]  ;;  %v1969_v43 = vld [vmem:[#allocation10 + $0x170] sm:$0xf0] }
  0x3d   :  { %451 = vmatpush.bf16.msra.mxu0 %v1924_v48 }
  0x3e   :  { %464 = vmatpush.bf16.msra.mxu1 %v1932_v49 }
  0x3f   :  { %477 = vmatpush.bf16.msra.mxu2 %v1940_v50 }
  0x41   :  { %452 = vmatpush.bf16.msra.mxu0 %v1923_v58  ;;  %v1972_v58 = vld [vmem:[#allocation10 + $0x3c] sm:$0xf0] }
  0x42   :  { %465 = vmatpush.bf16.msra.mxu1 %v1931_v59  ;;  %v1756_v59 = vld [vmem:[#allocation10 + $0x98] sm:$0xf] }
  0x43   :  { %478 = vmatpush.bf16.msra.mxu2 %v1939_v60  ;;  %v1948_v60 = vld [vmem:[%s2509_s5 + $0x10] sm:$0xff] }
  0x45   :  { %453 = vmatpush.bf16.msra.mxu0 %v1922_v61 }
  0x46   :  { %466 = vmatpush.bf16.msra.mxu1 %v1930_v62  ;;  %v1992_v62 = vld [vmem:[#allocation10 + $0xa0] sm:$0xf0] }
  0x47   :  { %479 = vmatpush.bf16.msra.mxu2 %v1938_v63  ;;  %v1757_v63 = vor.u32 %v1992_v62, %v1756_v59  ;;  %v1652_v59 = vld [vmem:[#allocation10 + $0x120] sm:$0xf] }
  0x49   :  { %704 = vmatpush.bf16.msrb.mxu0 %v1633_v4  ;;  %v1947_v4 = vld [vmem:[%s2509_s5 + $0x8] sm:$0xff] }
  0x4b   :  { %858 = vmatpush.bf16.msrb.mxu2 %v1697_v12  ;;  %v1748_v12 = vld [vmem:[#allocation10 + $0x68] sm:$0xf] }
  0x4c   :  { %v1749_v14 = vor.u32 %v1990_v13, %v1748_v12 }
  0x4d   :  { %705 = vmatpush.bf16.msrb.mxu0 %v1629_v7  ;;  %v1753_v7 = vor.u32 %v1991_v6, %v1752_v3  ;;  %v1649_v6 = vor.u32 %v1965_v2, %v1648_v1 }
  0x4f   :  { %859 = vmatpush.bf16.msrb.mxu2 %v1693_v16  ;;  %v1989_v16 = vld [vmem:[#allocation10 + $0x58] sm:$0xf0] }
  0x51   :  { %706 = vmatpush.bf16.msrb.mxu0 %v1625_v17  ;;  %v1745_v17 = vor.u32 %v1989_v16, %v1744_v15  ;;  %v1640_v16 = vld [vmem:[#allocation10 + $0xd8] sm:$0xf] }
  0xa2   :  { %v192_v18 = vpop.xlane.xlu0 %191 }
  0xa3   :  { %v193_v19 = vrot.slane %v192_v18, 4 }
  0xa5   :  { %v194_v20 = vadd.f32 %v193_v19, %v192_v18  ;;  %v1688_v18 = vld [vmem:[#allocation10 + $0x7c] sm:$0xf]  ;;  %v1975_v19 = vld [vmem:[#allocation10 + $0x84] sm:$0xf0] }
  0xa7   :  { %v195_v21 = vrot.slane %v194_v20, 2 }
  0xa9   :  { %v196_v22 = vadd.f32 %v195_v21, %v194_v20  ;;  %v1620_v20 = vld [vmem:[#allocation10 + $0x60] sm:$0xf]  ;;  %v1958_v21 = vld [vmem:[#allocation10 + $0x68] sm:$0xf0] }
  0xaa   :  { %v214_v23 = vpop.xlane.xlu0 %213 }
  0xab   :  { %v215_v24 = vrot.slane %v214_v23, 4  ;;  %v197_v25 = vrot.slane %v196_v22, 1 }
  0xad   :  { %v216_v26 = vadd.f32 %v215_v24, %v214_v23  ;;  %v198_v27 = vadd.f32 %v197_v25, %v196_v22  ;;  %v1951_v22 = vld [vmem:[%s2509_s5 + $0x28] sm:$0xff]  ;;  %v1689_v23 = vor.u32 %v1975_v19, %v1688_v18  ;;  %v1621_v24 = vor.u32 %v1958_v21, %v1620_v20  ;;  %v1684_v25 = vld [vmem:[#allocation10 + $0x64] sm:$0xf]  ;;  %v1736_v21 = vld [vmem:[#allocation10 + $0x20] sm:$0xf] }
  0xae   :  { %557 = vmatpush.bf16.msra.mxu3 %v1951_v22  ;;  %v1740_v18 = vld [vmem:[#allocation10 + $0x38] sm:$0xf]  ;;  %v1988_v19 = vld [vmem:[#allocation10 + $0x40] sm:$0xf0]  ;;  %v1987_v22 = vld [vmem:[#allocation10 + $0x28] sm:$0xf0] }
  0xaf   :  { %v217_v28 = vrot.slane %v216_v26, 2  ;;  %2034 = vpush %v198_v27  ;;  %v1616_v27 = vld [vmem:[#allocation10 + $0x48] sm:$0xf]  ;;  %860 = vmatpush.bf16.msrb.mxu2 %v1689_v23  ;;  %707 = vmatpush.bf16.msrb.mxu0 %v1621_v24  ;;  %v1741_v20 = vor.u32 %v1988_v19, %v1740_v18  ;;  %v1737_v23 = vor.u32 %v1987_v22, %v1736_v21  ;;  %v1716_v19 = vld [vmem:[#allocation10 + $0x124] sm:$0xf] }
  0xb0   :  { %v1732_v24 = vld [vmem:[#allocation10 + $0x8] sm:$0xf]  ;;  %v1636_v22 = vld [vmem:[#allocation10 + $0xc0] sm:$0xf] }
  0xb1   :  { %v218_v29 = vadd.f32 %v217_v28, %v216_v26  ;;  %v1974_v26 = vld [vmem:[#allocation10 + $0x6c] sm:$0xf0]  ;;  %v1957_v28 = vld [vmem:[#allocation10 + $0x50] sm:$0xf0] }
  0xb3   :  { %v219_v30 = vrot.slane %v218_v29, 1 }
  0xb5   :  { %v220_v31 = vadd.f32 %v219_v30, %v218_v29  ;;  %v1950_v29 = vld [vmem:[%s2509_s5 + $0x20] sm:$0xff]  ;;  %v1685_v30 = vor.u32 %v1974_v26, %v1684_v25 }
  0xb6   :  { %558 = vmatpush.bf16.msra.mxu3 %v1950_v29  ;;  %v1986_v25 = vld [vmem:[#allocation10 + $0x10] sm:$0xf0] }
  0xb7   :  { %2036 = vpush %v220_v31  ;;  %v1617_v31 = vor.u32 %v1957_v28, %v1616_v27  ;;  %861 = vmatpush.bf16.msrb.mxu2 %v1685_v30  ;;  %v1733_v26 = vor.u32 %v1986_v25, %v1732_v24  ;;  %v301_v27 = vld [vmem:[#allocation4] sm:$0x1]  ;;  %v1712_v25 = vld [vmem:[#allocation10 + $0x10c] sm:$0xf] }
  0xb9   :  { %708 = vmatpush.bf16.msrb.mxu0 %v1617_v31 }
  0xbd   :  { %709 = vmatpush.bf16.msrb.mxu0 %v1613_v34 }
  0xc1   :  { %710 = vmatpush.bf16.msrb.mxu0 %v1609_v39 }
  0xc5   :  { %711 = vmatpush.bf16.msrb.mxu0 %v1605_v47  ;;  %v1728_v47 = vld [vmem:[#allocation10 + $0x16c] sm:$0xf] }
  0xe0   :  { %s2035_s0 = spop %2034 }
  0xe1   :  { %s2427_s13 = smul.f32 0.0026041667, %s2035_s0 }
  0xe3   :  { %s223_s24 = smul.f32 384.0, %s2427_s13  ;;  %v227_v35 = vstv %s2427_s13 }
  0xe4   :  { %v228_v38 = vsub.f32 %v2414_v0, %v227_v35  ;;  %v1680_v0 = vld [vmem:[#allocation10 + $0x4c] sm:$0xf] }
  0xe5   :  { %s224_s25 = smul.f32 %s223_s24, %s2427_s13 }
  0xe8   :  { %s2037_s2 = spop %2036 }
  0xe9   :  { %s225_s26 = ssub.f32 %s2037_s2, %s224_s25 }
  0xeb   :  { %s226_s27 = smul.f32 0.002610966, %s225_s26 }
  0xed   :  { %v229_v44 = vstv %s226_s27 }
  0xee   :  { %2058 = vrsqrt.f32 %v229_v44  ;;  %vm236_vm2 = vweird.f32 %v229_v44 }
  0xf4   :  { %v2059_v51 = vpop.eup %2058 }
  0xf5   :  { %v231_v52 = vmul.f32 %v2059_v51, %v229_v44  ;;  %vm237_vm1 = vweird.f32 %v2059_v51 }
  0xf6   :  { %vm238_vm3 = vmor %vm236_vm2, %vm237_vm1 }
  0xf7   :  { %v232_v53 = vmul.f32 %v2059_v51, %v231_v52  ;;  %v1760_v52 = vld [vmem:[#allocation10 + $0xb0] sm:$0xf] }
  0xf9   :  { %v233_v54 = vmul.f32 0.5, %v232_v53  ;;  %v1949_v53 = vld [vmem:[%s2509_s5 + $0x18] sm:$0xff] }
  0xfa   :  { %559 = vmatpush.bf16.msra.mxu3 %v1949_v53  ;;  %v1984_v53 = vld [vmem:[#allocation10 + $0x15c] sm:$0xf0] }
  0xfb   :  { %v234_v55 = vsub.f32 1.5, %v233_v54 }
  0xfd   :  { %v235_v56 = vmul.f32 %v2059_v51, %v234_v55  ;;  %v1993_v55 = vld [vmem:[#allocation10 + $0xb8] sm:$0xf0] }
  0xfe   :  { %560 = vmatpush.bf16.msra.mxu3 %v1948_v60  ;;  %v1966_v60 = vld [vmem:[#allocation10 + $0x128] sm:$0xf0] }
  0xff   :  { %v239_v57 = vsel %vm238_vm3, %v2059_v51, %v235_v56  ;;  %v1973_v51 = vld [vmem:[#allocation10 + $0x54] sm:$0xf0]  ;;  %v1761_v56 = vor.u32 %v1993_v55, %v1760_v52  ;;  %v1724_v52 = vld [vmem:[#allocation10 + $0x154] sm:$0xf]  ;;  %v1653_v62 = vor.u32 %v1966_v60, %v1652_v59 }
 0x100   :  { %2038 = vpush %v239_v57  ;;  %v1681_v54 = vor.u32 %v1973_v51, %v1680_v0  ;;  %v1676_v57 = vld [vmem:[#allocation10 + $0x34] sm:$0xf]  ;;  %v1967_v0 = vld [vmem:[#allocation10 + $0x140] sm:$0xf0] }
 0x101   :  { %v1677_v61 = vor.u32 %v1972_v58, %v1676_v57  ;;  %v1983_v57 = vld [vmem:[#allocation10 + $0x144] sm:$0xf0]  ;;  %v1994_v59 = vld [vmem:[#allocation10 + $0xd0] sm:$0xf0] }
 0x102   :  { %862 = vmatpush.bf16.msrb.mxu2 %v1681_v54  ;;  %561 = vmatpush.bf16.msra.mxu3 %v1947_v4  ;;  %v1725_v54 = vor.u32 %v1984_v53, %v1724_v52  ;;  %v1996_v52 = vld [vmem:[#allocation10 + $0x100] sm:$0xf0] }
 0x106   :  { %863 = vmatpush.bf16.msrb.mxu2 %v1677_v61  ;;  %562 = vmatpush.bf16.msra.mxu3 %v1946_v10 }
 0x10a   :  { %864 = vmatpush.bf16.msrb.mxu2 %v1673_v5 }
 0x10e   :  { %865 = vmatpush.bf16.msrb.mxu2 %v1669_v11  ;;  %v1645_v11 = vor.u32 %v1964_v9, %v1644_v8  ;;  %v1081_v8 = vld [vmem:[#allocation12 + $0x68] sm:$0xff]  ;;  %v1080_v9 = vld [vmem:[#allocation12 + $0x60] sm:$0xff] }
 0x131   :  { %s2039_s17 = spop %2038 }
 0x132   :  { %v241_v40 = vstv %s2039_s17 }
 0x133   :  { %v242_v41 = vmul.f32 %v241_v40, %v228_v38 }
 0x135   :  { %v244_v44 = vperm.slane %v242_v41, 0  ;;  %v245_v45 = vperm.slane %v242_v41, 1  ;;  %v246_v46 = vperm.slane %v242_v41, 2 }
 0x137   :  { %v250_v48 = vpack.c.bf16 %v244_v44, %v244_v44  ;;  %v251_v49 = vpack.c.bf16 %v245_v45, %v245_v45  ;;  %v252_v50 = vpack.c.bf16 %v246_v46, %v246_v46  ;;  %v1660_v44 = vld [vmem:[#allocation10 + $0x150] sm:$0xf]  ;;  %v1665_v45 = vor.u32 %v1969_v43, %v1664_v42  ;;  %v1968_v46 = vld [vmem:[#allocation10 + $0x158] sm:$0xf0]  ;;  %v1700_v42 = vld [vmem:[#allocation10 + $0xc4] sm:$0xf] }
 0x138   :  { %v1978_v43 = vld [vmem:[#allocation10 + $0xcc] sm:$0xf0] }
 0x139   :  { %454 = vmatmul.bf16.vlgmr.msra.gmra.mxu0 %v250_v48  ;;  %467 = vmatmul.bf16.vlgmr.msra.gmra.mxu1 %v251_v49  ;;  %v1661_v48 = vor.u32 %v1968_v46, %v1660_v44  ;;  %v1656_v49 = vld [vmem:[#allocation10 + $0x138] sm:$0xf]  ;;  %v1998_v46 = vld [vmem:[#allocation10 + $0x130] sm:$0xf0] }
 0x13a   :  { %480 = vmatmul.bf16.vlgmr.msra.gmra.mxu2 %v252_v50  ;;  %1012 = vmatpush.bf16.msra.mxu0 %v1761_v56  ;;  %v1985_v50 = vld [vmem:[#allocation10 + $0x174] sm:$0xf0]  ;;  %v1657_v55 = vor.u32 %v1967_v0, %v1656_v49  ;;  %v1720_v56 = vld [vmem:[#allocation10 + $0x13c] sm:$0xf]  ;;  %v1776_v49 = vld [vmem:[#allocation10 + $0x110] sm:$0xf] }
 0x13b   :  { %717 = vmatpush.bf16.msrb.mxu1 %v1665_v45  ;;  %v1729_v51 = vor.u32 %v1985_v50, %v1728_v47  ;;  %v1721_v61 = vor.u32 %v1983_v57, %v1720_v56  ;;  %v1780_v45 = vld [vmem:[#allocation10 + $0x128] sm:$0xf]  ;;  %v1701_v47 = vor.u32 %v1978_v43, %v1700_v42  ;;  %v1997_v50 = vld [vmem:[#allocation10 + $0x118] sm:$0xf0]  ;;  %v1908_v43 = vld [vmem:[#allocation15 + $0xe0] sm:$0xf] }
 0x13c   :  { %v1777_v0 = vor.u32 %v1997_v50, %v1776_v49  ;;  %v1764_v57 = vld [vmem:[#allocation10 + $0xc8] sm:$0xf]  ;;  %v2033_v49 = vld [vmem:[#allocation15 + $0xf4] sm:$0xf0] }
 0x13d   :  { %871 = vmatpush.bf16.msrb.mxu3 %v1729_v51  ;;  %v1772_v51 = vld [vmem:[#allocation10 + $0xf8] sm:$0xf] }
 0x13e   :  { %1013 = vmatpush.bf16.msra.mxu0 %v1757_v63  ;;  %v506_v63 = vld [vmem:[#allocation9] sm:$0x1]  ;;  %v1773_v53 = vor.u32 %v1996_v52, %v1772_v51  ;;  %v2031_v51 = vld [vmem:[#allocation15 + $0xec] sm:$0xf] }
 0x13f   :  { %718 = vmatpush.bf16.msrb.mxu1 %v1661_v48  ;;  %v1781_v48 = vor.u32 %v1998_v46, %v1780_v45  ;;  %v2030_v45 = vld [vmem:[#allocation15 + $0xe4] sm:$0xf]  ;;  %v1918_v52 = vld [vmem:[#allocation15 + $0xf8] sm:$0xf0] }
 0x141   :  { %872 = vmatpush.bf16.msrb.mxu3 %v1725_v54  ;;  %v1768_v54 = vld [vmem:[#allocation10 + $0xe0] sm:$0xf] }
 0x142   :  { %1014 = vmatpush.bf16.msra.mxu0 %v1753_v7 }
 0x143   :  { %719 = vmatpush.bf16.msrb.mxu1 %v1657_v55  ;;  %v1995_v55 = vld [vmem:[#allocation10 + $0xe8] sm:$0xf0] }
 0x144   :  { %v1769_v56 = vor.u32 %v1995_v55, %v1768_v54  ;;  %v1892_v54 = vld [vmem:[#allocation15 + $0xc0] sm:$0xf]  ;;  %v2028_v55 = vld [vmem:[#allocation15 + $0xcc] sm:$0xf0] }
 0x145   :  { %873 = vmatpush.bf16.msrb.mxu3 %v1721_v61  ;;  %v1765_v61 = vor.u32 %v1994_v59, %v1764_v57  ;;  %v1893_v57 = vor.u32 %v2028_v55, %v1892_v54  ;;  %v1894_v59 = vld [vmem:[#allocation15 + $0xd0] sm:$0xf0]  ;;  %v1812_v54 = vld [vmem:[#allocation15 + $0x20] sm:$0xf]  ;;  %v2008_v55 = vld [vmem:[#allocation15 + $0x2c] sm:$0xf0] }
 0x146   :  { %1015 = vmatpush.bf16.msra.mxu0 %v1749_v14 }
 0x147   :  { %720 = vmatpush.bf16.msrb.mxu1 %v1653_v62  ;;  %v1083_v62 = vld [vmem:[#allocation12 + $0x78] sm:$0xff] }
 0x148   :  { %1084 = vmatpush.msra.mxu2 %v1083_v62 }
 0x14a   :  { %1016 = vmatpush.bf16.msra.mxu0 %v1745_v17  ;;  %v1963_v17 = vld [vmem:[#allocation10 + $0xe0] sm:$0xf0] }
 0x14b   :  { %721 = vmatpush.bf16.msrb.mxu1 %v1649_v6  ;;  %v1641_v18 = vor.u32 %v1963_v17, %v1640_v16  ;;  %v1073_v16 = vld [vmem:[#allocation12 + $0x28] sm:$0xff]  ;;  %v1072_v17 = vld [vmem:[#allocation12 + $0x20] sm:$0xff] }
 0x14e   :  { %1017 = vmatpush.bf16.msra.mxu0 %v1741_v20  ;;  %v1982_v20 = vld [vmem:[#allocation10 + $0x12c] sm:$0xf0] }
 0x14f   :  { %722 = vmatpush.bf16.msrb.mxu1 %v1645_v11  ;;  %v1717_v21 = vor.u32 %v1982_v20, %v1716_v19  ;;  %v1078_v11 = vld [vmem:[#allocation12 + $0x50] sm:$0xff]  ;;  %v1069_v20 = vld [vmem:[#allocation12 + $0x8] sm:$0xff] }
 0x150   :  { %v1070_v19 = vld [vmem:[#allocation12 + $0x10] sm:$0xff] }
 0x151   :  { %874 = vmatpush.bf16.msrb.mxu3 %v1717_v21  ;;  %v1068_v21 = vld [vmem:[#allocation12] sm:$0xff] }
 0x152   :  { %1018 = vmatpush.bf16.msra.mxu0 %v1737_v23  ;;  %v1962_v23 = vld [vmem:[#allocation10 + $0xc8] sm:$0xf0] }
 0x153   :  { %723 = vmatpush.bf16.msrb.mxu1 %v1641_v18  ;;  %v1637_v24 = vor.u32 %v1962_v23, %v1636_v22  ;;  %v1071_v18 = vld [vmem:[#allocation12 + $0x18] sm:$0xff] }
 0x156   :  { %1019 = vmatpush.bf16.msra.mxu0 %v1733_v26  ;;  %v1981_v26 = vld [vmem:[#allocation10 + $0x114] sm:$0xf0] }
 0x157   :  { %724 = vmatpush.bf16.msrb.mxu1 %v1637_v24 }
 0x1b6   :  { %v455_v28 = vpop.f32.mrf.mxu0  ;;  %v468_v29 = vpop.f32.mrf.mxu1 }
 0x1b7   :  { %v456_v30 = vadd.f32 %v455_v28, %v301_v27  ;;  %v1792_v27 = vld [vmem:[#allocation10 + $0x170] sm:$0xf]  ;;  %v1713_v28 = vor.u32 %v1981_v26, %v1712_v25 }
 0x1b9   :  { %v469_v31 = vadd.f32 %v468_v29, %v456_v30  ;;  %v2001_v29 = vld [vmem:[#allocation10 + $0x178] sm:$0xf0]  ;;  %875 = vmatpush.bf16.msrb.mxu3 %v1713_v28 }
 0x1ba   :  { %v1793_v30 = vor.u32 %v2001_v29, %v1792_v27 }
 0x1bc   :  { %1025 = vmatpush.bf16.msra.mxu1 %v1793_v30 }
 0x1bd   :  { %v481_v32 = vpop.f32.mrf.mxu2 }
 0x1be   :  { %v482_v34 = vadd.f32 %v481_v32, %v469_v31  ;;  %v457_v35 = vpop.f32.mrf.mxu0  ;;  %v470_v36 = vpop.f32.mrf.mxu1  ;;  %v1708_v31 = vld [vmem:[#allocation10 + $0xf4] sm:$0xf]  ;;  %v1980_v32 = vld [vmem:[#allocation10 + $0xfc] sm:$0xf0] }
 0x1bf   :  { %v2000_v35 = vld [vmem:[#allocation10 + $0x160] sm:$0xf0] }
 0x1c0   :  { %v486_v38 = vmul.f32 %v485_v33, %v482_v34  ;;  %v1788_v33 = vld [vmem:[#allocation10 + $0x158] sm:$0xf]  ;;  %v1709_v34 = vor.u32 %v1980_v32, %v1708_v31  ;;  %v1047_v32 = vld [vmem:[%s2512_s8] sm:$0x7] }
 0x1c1   :  { %v1789_v36 = vor.u32 %v2000_v35, %v1788_v33 }
 0x1c2   :  { %v488_v39 = vadd.f32 %v487_v37, %v486_v38  ;;  %876 = vmatpush.bf16.msrb.mxu3 %v1709_v34  ;;  %v1704_v37 = vld [vmem:[#allocation10 + $0xdc] sm:$0xf]  ;;  %v1979_v38 = vld [vmem:[#allocation10 + $0xe4] sm:$0xf0]  ;;  %v1049_v34 = vld [vmem:[%s2513_s9] sm:$0x7] }
 0x1c3   :  { %1026 = vmatpush.bf16.msra.mxu1 %v1789_v36  ;;  %v1055_v36 = vrot.slane %v1049_v34, 5 }
 0x1c4   :  { %v489_v40 = vpack.c.bf16 %v488_v39, %v488_v39  ;;  %v1784_v39 = vld [vmem:[#allocation10 + $0x140] sm:$0xf] }
 0x1c5   :  { %v483_v41 = vpop.f32.mrf.mxu2 }
 0x1c6   :  { %563 = vmatmul.bf16.vlgmr.msra.gmra.mxu3 %v489_v40  ;;  %712 = vmatmul.bf16.vlgmr.msrb.gmra.mxu0 %v489_v40  ;;  %v1999_v41 = vld [vmem:[#allocation10 + $0x148] sm:$0xf0] }
 0x1c7   :  { %866 = vmatmul.bf16.vlgmr.msrb.gmra.mxu2 %v489_v40  ;;  %v1785_v44 = vor.u32 %v1999_v41, %v1784_v39 }
 0x1c9   :  { %1027 = vmatpush.bf16.msra.mxu1 %v1785_v44  ;;  %v2032_v44 = vld [vmem:[#allocation15 + $0xec] sm:$0xf0] }
 0x1ca   :  { %v1909_v46 = vor.u32 %v2032_v44, %v1908_v43  ;;  %v2012_v43 = vld [vmem:[#allocation15 + $0x4c] sm:$0xf0]  ;;  %v2010_v44 = vld [vmem:[#allocation15 + $0x44] sm:$0xf] }
 0x1cd   :  { %1028 = vmatpush.bf16.msra.mxu1 %v1781_v48  ;;  %v1916_v48 = vld [vmem:[#allocation15 + $0xe8] sm:$0xf] }
 0x1d1   :  { %1029 = vmatpush.bf16.msra.mxu1 %v1777_v0  ;;  %v1917_v0 = vor.u32 %v2033_v49, %v1916_v48  ;;  %v2013_v48 = vld [vmem:[#allocation15 + $0x54] sm:$0xf0] }
 0x1d5   :  { %1030 = vmatpush.bf16.msra.mxu1 %v1773_v53  ;;  %v1921_v53 = vor.u32 %v2031_v51, %v1918_v52  ;;  %v1838_v51 = vld [vmem:[#allocation15 + $0x58] sm:$0xf0] }
 0x1d6   :  { %1020 = vmatmul.bf16.vlgmr.msra.gmra.mxu0 %v489_v40  ;;  %v1705_v40 = vor.u32 %v1979_v38, %v1704_v37 }
 0x1d8   :  { %877 = vmatpush.bf16.msrb.mxu3 %v1705_v40 }
 0x1d9   :  { %1031 = vmatpush.bf16.msra.mxu1 %v1769_v56  ;;  %v2026_v56 = vld [vmem:[#allocation15 + $0xc4] sm:$0xf] }
 0x1da   :  { %v1897_v62 = vor.u32 %v2026_v56, %v1894_v59  ;;  %v1813_v56 = vor.u32 %v2008_v55, %v1812_v54  ;;  %v1814_v59 = vld [vmem:[#allocation15 + $0x30] sm:$0xf0] }
 0x1dc   :  { %878 = vmatpush.bf16.msrb.mxu3 %v1701_v47  ;;  %v1910_v47 = vld [vmem:[#allocation15 + $0xf0] sm:$0xf0] }
 0x1dd   :  { %1032 = vmatpush.bf16.msra.mxu1 %v1765_v61  ;;  %v1913_v50 = vor.u32 %v2030_v45, %v1910_v47  ;;  %v2029_v61 = vld [vmem:[#allocation15 + $0xd4] sm:$0xf0]  ;;  %v1836_v47 = vld [vmem:[#allocation15 + $0x48] sm:$0xf] }
 0x1de   :  { %v1837_v52 = vor.u32 %v2013_v48, %v1836_v47 }
 0x1df   :  { %1372 = vmatpush.bf16.msrb.mxu0 %v1913_v50 }
 0x1e0   :  { %1359 = vmatpush.bf16.msra.mxu3 %v1909_v46  ;;  %v1830_v46 = vld [vmem:[#allocation15 + $0x50] sm:$0xf0] }
 0x1e1   :  { %v1833_v50 = vor.u32 %v2010_v44, %v1830_v46 }
 0x1e3   :  { %1373 = vmatpush.bf16.msrb.mxu0 %v1897_v62 }
 0x1e4   :  { %1360 = vmatpush.bf16.msra.mxu3 %v1893_v57  ;;  %v2006_v57 = vld [vmem:[#allocation15 + $0x24] sm:$0xf] }
 0x1e5   :  { %v1817_v62 = vor.u32 %v2006_v57, %v1814_v59 }
 0x243   :  { %v2457_v58 = vpop.f32.mrf.mxu0 }
 0x249   :  { %v564_v3 = vpop.f32.mrf.mxu3 }
 0x24a   :  { %v2459_v4 = vadd.f32 %v564_v3, %v506_v63  ;;  %v2461_v5 = vpop.f32.mrf.mxu2 }
 0x24b   :  { %v715_v7 = vpop.f32.mrf.mxu0 }
 0x24c   :  { %v568_v10 = vsel %vm185_vm0, %v2459_v4, -inf  ;;  %v1082_v7 = vld [vmem:[#allocation12 + $0x70] sm:$0xff] }
 0x24d   :  { %569 = vmax.xlane.f32.xlu1 %v568_v10  ;;  %1085 = vmatpush.msra.mxu2 %v1082_v7  ;;  %v1079_v10 = vld [vmem:[#allocation12 + $0x58] sm:$0xff]  ;;  %v2024_v7 = vld [vmem:[#allocation15 + $0xac] sm:$0xf0] }
 0x24f   :  { %1086 = vmatpush.msra.mxu2 %v1081_v8  ;;  %v2022_v8 = vld [vmem:[#allocation15 + $0xa4] sm:$0xf] }
 0x251   :  { %v566_v12 = vpop.f32.mrf.mxu3  ;;  %1087 = vmatpush.msra.mxu2 %v1080_v9 }
 0x252   :  { %v869_v13 = vpop.f32.mrf.mxu2  ;;  %v1077_v12 = vld [vmem:[#allocation12 + $0x48] sm:$0xff] }
 0x253   :  { %v2465_v14 = vpop.f32.mrf.mxu0  ;;  %1088 = vmatpush.msra.mxu2 %v1079_v10  ;;  %v1076_v13 = vld [vmem:[#allocation12 + $0x40] sm:$0xff]  ;;  %v1878_v10 = vld [vmem:[#allocation15 + $0xb0] sm:$0xf0] }
 0x255   :  { %1089 = vmatpush.msra.mxu2 %v1078_v11  ;;  %v1884_v11 = vld [vmem:[#allocation15 + $0xa8] sm:$0xf] }
 0x257   :  { %1090 = vmatpush.msra.mxu2 %v1077_v12  ;;  %v2025_v12 = vld [vmem:[#allocation15 + $0xb4] sm:$0xf0] }
 0x259   :  { %1091 = vmatpush.msra.mxu2 %v1076_v13  ;;  %v1881_v13 = vor.u32 %v2022_v8, %v1878_v10  ;;  %v2004_v8 = vld [vmem:[#allocation15 + $0xc] sm:$0xf0] }
 0x25b   :  { %v1023_v15 = vpop.f32.mrf.mxu0  ;;  %1374 = vmatpush.bf16.msrb.mxu0 %v1881_v13  ;;  %v1798_v13 = vld [vmem:[#allocation15 + $0x10] sm:$0xf0] }
 0x25c   :  { %v1074_v15 = vld [vmem:[#allocation12 + $0x30] sm:$0xff] }
 0x2c0   :  { %v570_v60 = vpop.xlane.xlu1 %569 }
 0x2c1   :  { %2060 = vrcp.f32 %v570_v60  ;;  %v1900_v60 = vld [vmem:[#allocation15 + $0xc8] sm:$0xf] }
 0x2c7   :  { %v2061_v63 = vpop.eup %2060 }
 0x2c8   :  { %v572_v1 = vmul.f32 0.8, %v2061_v63  ;;  %v1901_v63 = vor.u32 %v2029_v61, %v1900_v60  ;;  %v1820_v60 = vld [vmem:[#allocation15 + $0x28] sm:$0xf] }
 0x2ca   :  { %v573_v2 = vmul.f32 %v572_v1, %v2459_v4  ;;  %v1075_v4 = vld [vmem:[#allocation12 + $0x38] sm:$0xff]  ;;  %v2027_v1 = vld [vmem:[#allocation15 + $0xcc] sm:$0xf] }
 0x2cb   :  { %1092 = vmatpush.msra.mxu2 %v1075_v4  ;;  %v1885_v4 = vor.u32 %v2025_v12, %v1884_v11  ;;  %v2002_v12 = vld [vmem:[#allocation15 + $0x4] sm:$0xf] }
 0x2cc   :  { %2062 = vtanh.f32 %v573_v2  ;;  %v1902_v2 = vld [vmem:[#allocation15 + $0xd8] sm:$0xf0] }
 0x2cd   :  { %1093 = vmatpush.msra.mxu2 %v1074_v15  ;;  %v2023_v15 = vld [vmem:[#allocation15 + $0xac] sm:$0xf] }
 0x2cf   :  { %1094 = vmatpush.msra.mxu2 %v1073_v16  ;;  %v1886_v16 = vld [vmem:[#allocation15 + $0xb8] sm:$0xf0] }
 0x2d1   :  { %1095 = vmatpush.msra.mxu2 %v1072_v17  ;;  %v1889_v17 = vor.u32 %v2023_v15, %v1886_v16  ;;  %v1801_v15 = vor.u32 %v2002_v12, %v1798_v13  ;;  %v2005_v16 = vld [vmem:[#allocation15 + $0x14] sm:$0xf0] }
 0x2d2   :  { %v2063_v3 = vpop.eup %2062 }
 0x2d3   :  { %v575_v6 = vpack.c.bf16 %v2063_v3, %v2063_v3  ;;  %1096 = vmatpush.msra.mxu2 %v1071_v18  ;;  %v1905_v3 = vor.u32 %v2027_v1, %v1902_v2  ;;  %v1860_v18 = vld [vmem:[#allocation15 + $0x80] sm:$0xf]  ;;  %v2007_v1 = vld [vmem:[#allocation15 + $0x2c] sm:$0xf] }
 0x2d5   :  { %725 = vmatmul.bf16.vlgmr.msrb.gmra.mxu1 %v575_v6  ;;  %879 = vmatmul.bf16.vlgmr.msrb.gmra.mxu3 %v575_v6 }
 0x2d6   :  { %1097 = vmatpush.msra.mxu2 %v1070_v19  ;;  %1385 = vmatpush.bf16.msrb.mxu1 %v1917_v0  ;;  %v2020_v19 = vld [vmem:[#allocation15 + $0x8c] sm:$0xf0]  ;;  %v2011_v0 = vld [vmem:[#allocation15 + $0x4c] sm:$0xf] }
 0x2d8   :  { %1098 = vmatpush.msra.mxu2 %v1069_v20  ;;  %v2018_v20 = vld [vmem:[#allocation15 + $0x84] sm:$0xf] }
 0x2da   :  { %1099 = vmatpush.msra.mxu2 %v1068_v21  ;;  %1386 = vmatpush.bf16.msrb.mxu1 %v1901_v63  ;;  %v1861_v21 = vor.u32 %v2020_v19, %v1860_v18  ;;  %v2009_v63 = vld [vmem:[#allocation15 + $0x34] sm:$0xf0]  ;;  %v1806_v18 = vld [vmem:[#allocation15 + $0x18] sm:$0xf0] }
 0x2dc   :  { %1398 = vmatpush.bf16.msrb.mxu2 %v1921_v53  ;;  %v1841_v53 = vor.u32 %v2011_v0, %v1838_v51  ;;  %v1051_v51 = vld [vmem:[%s2514_s10 + $0x8] sm:$0x77] }
 0x2dd   :  { %1415 = vst [vmem:[#allocation1 + $0x10] ss:$2 sm:$0xff] %v1051_v51 }
 0x2de   :  { %1387 = vmatpush.bf16.msrb.mxu1 %v1885_v4  ;;  %v1804_v4 = vld [vmem:[#allocation15 + $0x8] sm:$0xf] }
 0x2e0   :  { %1399 = vmatpush.bf16.msrb.mxu2 %v1905_v3  ;;  %v1821_v3 = vor.u32 %v2009_v63, %v1820_v60 }
 0x2e4   :  { %1400 = vmatpush.bf16.msrb.mxu2 %v1889_v17  ;;  %v2003_v17 = vld [vmem:[#allocation15 + $0xc] sm:$0xf] }
 0x2e5   :  { %1033 = vmatmul.bf16.vlgmr.msra.gmra.mxu1 %v575_v6  ;;  %v1876_v6 = vld [vmem:[#allocation15 + $0xa0] sm:$0xf]  ;;  %v1419_v63 = vld.sshfl [vmem:[#allocation1 + $0x18] sm:$0xff pattern:$0x75316420] }
 0x2e6   :  { %v1877_v9 = vor.u32 %v2024_v7, %v1876_v6  ;;  %v1822_v6 = vld [vmem:[#allocation15 + $0x38] sm:$0xf0]  ;;  %v1796_v7 = vld [vmem:[#allocation15] sm:$0xf] }
 0x2e7   :  { %v1825_v10 = vor.u32 %v2007_v1, %v1822_v6  ;;  %v1797_v11 = vor.u32 %v2004_v8, %v1796_v7 }
 0x2e8   :  { %1361 = vmatpush.bf16.msra.mxu3 %v1877_v9 }
 0x2ec   :  { %1362 = vmatpush.bf16.msra.mxu3 %v1861_v21  ;;  %v1809_v21 = vor.u32 %v2003_v17, %v1806_v18 }
 0x352   :  { %v726_v22 = vpop.f32.mrf.mxu1 }
 0x353   :  { %v727_v30 = vadd.f32 %v726_v22, %v2457_v58  ;;  %v1862_v22 = vld [vmem:[#allocation15 + $0x90] sm:$0xf0] }
 0x358   :  { %v880_v23 = vpop.f32.mrf.mxu3 }
 0x359   :  { %v881_v25 = vadd.f32 %v880_v23, %v2461_v5  ;;  %v1868_v23 = vld [vmem:[#allocation15 + $0x88] sm:$0xf] }
 0x35a   :  { %v728_v24 = vpop.f32.mrf.mxu1 }
 0x35b   :  { %v1039_v27 = vrot.slane %v881_v25, 7  ;;  %v2021_v24 = vld [vmem:[#allocation15 + $0x94] sm:$0xf0]  ;;  %v1865_v25 = vor.u32 %v2018_v20, %v1862_v22  ;;  %v1805_v20 = vor.u32 %v2005_v16, %v1804_v4 }
 0x35d   :  { %v1044_v33 = vsel %vm185_vm0, %v727_v30, %v1039_v27  ;;  %v2019_v27 = vld [vmem:[#allocation15 + $0x8c] sm:$0xf]  ;;  %1375 = vmatpush.bf16.msrb.mxu0 %v1865_v25 }
 0x360   :  { %v882_v26 = vpop.f32.mrf.mxu3 }
 0x361   :  { %v1869_v26 = vor.u32 %v2021_v24, %v1868_v23  ;;  %v1050_v24 = vld [vmem:[%s2514_s10] sm:$0x77] }
 0x362   :  { %v1034_v28 = vpop.f32.mrf.mxu1  ;;  %1413 = vst [vmem:[#allocation1] ss:$2 sm:$0xff] %v1050_v24 }
 0x363   :  { %v1035_v29 = vadd.f32 %v1034_v28, %v2465_v14  ;;  %v1870_v28 = vld [vmem:[#allocation15 + $0x98] sm:$0xf0]  ;;  %1388 = vmatpush.bf16.msrb.mxu1 %v1869_v26 }
 0x364   :  { %v1873_v30 = vor.u32 %v2019_v27, %v1870_v28 }
 0x365   :  { %v1042_v31 = vrot.slane %v1035_v29, 6  ;;  %v2057_v29 = vld [vmem:[#allocation13] ss:$0 sm:$0xff] }
 0x366   :  { %1401 = vmatpush.bf16.msrb.mxu2 %v1873_v30 }
 0x367   :  { %v1046_v5 = vsel %vm1045_vm4, %v1044_v33, %v1042_v31  ;;  %v1844_v31 = vld [vmem:[#allocation15 + $0x60] sm:$0xf]  ;;  %v2014_v33 = vld [vmem:[#allocation15 + $0x64] sm:$0xf] }
 0x368   :  { %v1048_v35 = vadd.f32 %v1047_v32, %v1046_v5  ;;  %v2016_v32 = vld [vmem:[#allocation15 + $0x6c] sm:$0xf0]  ;;  %v1846_v5 = vld [vmem:[#allocation15 + $0x70] sm:$0xf0] }
 0x36a   :  { %v1036_v37 = vpop.f32.mrf.mxu1  ;;  %v1052_v14 = vmul.f32 %v1049_v34, %v1048_v35  ;;  %v1064_v38 = vsel %vm1063_vm5, %v1048_v35, %v1055_v36  ;;  %v1053_v40 = vmul.f32 %v1048_v35, %v1048_v35  ;;  %v1845_v34 = vor.u32 %v2016_v32, %v1844_v31  ;;  %v1852_v35 = vld [vmem:[#allocation15 + $0x68] sm:$0xf]  ;;  %v2017_v36 = vld [vmem:[#allocation15 + $0x74] sm:$0xf0] }
 0x36b   :  { %v1849_v37 = vor.u32 %v2014_v33, %v1846_v5 }
 0x36c   :  { %v1058_v58 = vrot.slane %v1052_v14, 2  ;;  %v1061_v41 = vrot.slane %v1053_v40, 7  ;;  %v1853_v14 = vor.u32 %v2017_v36, %v1852_v35  ;;  %1363 = vmatpush.bf16.msra.mxu3 %v1845_v34 }
 0x36d   :  { %1376 = vmatpush.bf16.msrb.mxu0 %v1849_v37 }
 0x36e   :  { %v1066_v39 = vsel %vm1065_vm6, %v1064_v38, %v1058_v58  ;;  %v1067_v42 = vsel %vm185_vm0, %v1058_v58, %v1061_v41  ;;  %v2015_v58 = vld [vmem:[#allocation15 + $0x6c] sm:$0xf]  ;;  %v1854_v38 = vld [vmem:[#allocation15 + $0x78] sm:$0xf0]  ;;  %1389 = vmatpush.bf16.msrb.mxu1 %v1853_v14 }
 0x36f   :  { %1100 = vmatmul.f32.vlgmr.msra.gmra.mxu2 %v1066_v39  ;;  %v1857_v40 = vor.u32 %v2015_v58, %v1854_v38 }
 0x371   :  { %1402 = vmatpush.bf16.msrb.mxu2 %v1857_v40  ;;  %1377 = vmatpush.bf16.msrb.mxu0 %v1833_v50 }
 0x372   :  { %1390 = vmatpush.bf16.msrb.mxu1 %v1837_v52  ;;  %v1417_v52 = vld.sshfl [vmem:[#allocation1 + $0x8] sm:$0xff pattern:$0x75316420] }
 0x375   :  { %1403 = vmatpush.bf16.msrb.mxu2 %v1841_v53  ;;  %1378 = vmatpush.bf16.msrb.mxu0 %v1817_v62 }
 0x376   :  { %1391 = vmatpush.bf16.msrb.mxu1 %v1821_v3 }
 0x377   :  { %1103 = vmatmul.f32.gmra.mxu2 %v1067_v42  ;;  %v1828_v42 = vld [vmem:[#allocation15 + $0x40] sm:$0xf] }
 0x378   :  { %v1829_v45 = vor.u32 %v2012_v43, %v1828_v42 }
 0x379   :  { %1404 = vmatpush.bf16.msrb.mxu2 %v1825_v10  ;;  %1379 = vmatpush.bf16.msrb.mxu0 %v1801_v15 }
 0x37a   :  { %1364 = vmatpush.bf16.msra.mxu3 %v1829_v45  ;;  %1392 = vmatpush.bf16.msrb.mxu1 %v1805_v20 }
 0x37d   :  { %1405 = vmatpush.bf16.msrb.mxu2 %v1809_v21 }
 0x37e   :  { %1365 = vmatpush.bf16.msra.mxu3 %v1813_v56 }
 0x382   :  { %1366 = vmatpush.bf16.msra.mxu3 %v1797_v11 }
 0x3f2   :  { %v1101_v39 = vpop.f32.mrf.mxu2 }
 0x3f3   :  { %v2481_v41 = vmul.f32 %v2057_v29, %v1101_v39 }
 0x3f5   :  { %v1122_v49 = vmul.f32 %v2481_v41, %v2481_v41  ;;  %v1114_v25 = vrot.slane %v2481_v41, 3  ;;  %v1147_v39 = vrot.slane %v2481_v41, 2 }
 0x3f7   :  { %v1124_v61 = vrot.slane %v1122_v49, 7  ;;  %v1116_v27 = vmul.f32 %v1114_v25, %v2481_v41 }
 0x3f9   :  { %v1118_v31 = vrot.slane %v1116_v27, 2 }
 0x3fa   :  { %v1104_v2 = vpop.f32.mrf.mxu2 }
 0x3fb   :  { %v1112_v9 = vmul.f32 %v2057_v29, %v1104_v2  ;;  %v1120_v35 = vsub.f32 %v2481_v41, %v1118_v31 }
 0x3fd   :  { %v1126_v19 = vsub.f32 %v1112_v9, %v1124_v61  ;;  %v1121_v36 = vsub.f32 %v1112_v9, %v1118_v31  ;;  %v1416_v61 = vld.sshfl [vmem:[#allocation1] sm:$0xff pattern:$0x75316420] }
 0x3ff   :  { %v1127_v22 = vadd.f32 1e-08, %v1126_v19 }
 0x401   :  { %v1129_v23 = vrot.slane %v1127_v22, 3 }
 0x403   :  { %2064 = vrcp.f32 %v1129_v23  ;;  %v1142_v30 = vand.u32 2147483648, %v1129_v23  ;;  %v1140_v33 = vand.u32 2147483647, %v1129_v23  ;;  %vm1136_vm8 = vweird.f32 %v1129_v23 }
 0x405   :  { %v1143_v5 = vor.u32 1.1754944e-38, %v1142_v30  ;;  %vm1141_vm10 = vcmp.eq.f32.partialorder %v1140_v33, 8.507059e+37 }
 0x409   :  { %v2065_v26 = vpop.eup %2064 }
 0x40a   :  { %v1132_v28 = vmul.f32 %v2065_v26, %v1129_v23  ;;  %vm1137_vm7 = vweird.f32 %v2065_v26 }
 0x40b   :  { %vm1138_vm9 = vmor %vm1136_vm8, %vm1137_vm7 }
 0x40c   :  { %v1133_v29 = vsub.f32 1.0, %v1132_v28 }
 0x40e   :  { %v1134_v32 = vmul.f32 %v2065_v26, %v1133_v29 }
 0x410   :  { %v1135_v34 = vadd.f32 %v2065_v26, %v1134_v32 }
 0x412   :  { %v1139_v37 = vsel %vm1138_vm9, %v2065_v26, %v1135_v34 }
 0x413   :  { %v1144_v14 = vsel %vm1141_vm10, %v1143_v5, %v1139_v37 }
 0x414   :  { %v1145_v58 = vmul.f32 %v1144_v14, %v1120_v35  ;;  %v1146_v38 = vmul.f32 %v1144_v14, %v1121_v36 }
 0x416   :  { %v1149_v40 = vmul.f32 %v1147_v39, %v1145_v58  ;;  %v1150_v42 = vmul.f32 %v1147_v39, %v1146_v38  ;;  %v1161_v45 = vrot.slane %v1145_v58, 6  ;;  %v1162_v46 = vrot.slane %v1146_v38, 6 }
 0x418   :  { %v1154_v43 = vrot.slane %v1149_v40, 3  ;;  %v1155_v44 = vrot.slane %v1150_v42, 3  ;;  %v1163_v49 = vsel %vm1045_vm4, %v1161_v45, %v1162_v46 }
 0x41a   :  { %v1156_v47 = vsel %vm1153_vm11, %v1154_v43, %v1155_v44 }
 0x41b   :  { %v1158_v48 = vsub.f32 %v2481_v41, %v1156_v47  ;;  %v1418_v41 = vld.sshfl [vmem:[#allocation1 + $0x10] sm:$0xff pattern:$0x75316420] }
 0x41d   :  { %v1165_v50 = vsel %vm1063_vm5, %v1163_v49, %v1158_v48 }
 0x41e   :  { %v1166_v0 = vpack.c.bf16 %v1165_v50, %v1165_v50 }
 0x420   :  { %1367 = vmatmul.bf16.vlgmr.msra.gmra.mxu3 %v1166_v0  ;;  %1380 = vmatmul.bf16.vlgmr.msrb.gmra.mxu0 %v1166_v0 }
 0x421   :  { %1393 = vmatmul.bf16.vlgmr.msrb.gmra.mxu1 %v1166_v0  ;;  %1406 = vmatmul.bf16.vlgmr.msrb.gmra.mxu2 %v1166_v0 }
 0x49d   :  { %v1381_v53 = vpop.f32.mrf.mxu0 }
 0x49e   :  { %v1425_v54 = vmul.f32 %v1417_v52, %v1381_v53  ;;  %v1433_v55 = vrot.slane %v1381_v53, 3  ;;  %v1394_v56 = vpop.f32.mrf.mxu1 }
 0x49f   :  { %v1426_v59 = vmul.f32 %v1418_v41, %v1394_v56  ;;  %v1434_v60 = vrot.slane %v1394_v56, 3 }
 0x4a0   :  { %v1441_v57 = vadd.f32 %v1433_v55, %v1425_v54 }
 0x4a1   :  { %v1442_v7 = vadd.f32 %v1434_v60, %v1426_v59 }
 0x4a2   :  { %v1445_v62 = vmax.f32 %v1441_v57, 0.0 }
 0x4a3   :  { %v1368_v1 = vpop.f32.mrf.mxu3  ;;  %v1446_v16 = vmax.f32 %v1442_v7, 0.0 }
 0x4a4   :  { %v1424_v2 = vmul.f32 %v1416_v61, %v1368_v1  ;;  %v1432_v3 = vrot.slane %v1368_v1, 3  ;;  %v1407_v6 = vpop.f32.mrf.mxu2  ;;  %v1449_v11 = vmin.f32 %v1445_v62, 1.0 }
 0x4a5   :  { %v1427_v8 = vmul.f32 %v1419_v63, %v1407_v6  ;;  %v1435_v9 = vrot.slane %v1407_v6, 3  ;;  %v1383_v10 = vpop.f32.mrf.mxu0  ;;  %v1450_v24 = vmin.f32 %v1446_v16, 1.0 }
 0x4a6   :  { %v1440_v12 = vadd.f32 %v1432_v3, %v1424_v2  ;;  %v1396_v13 = vpop.f32.mrf.mxu1  ;;  %v1456_v18 = vrot.slane %v1449_v11, 4 }
 0x4a7   :  { %v1443_v4 = vadd.f32 %v1435_v9, %v1427_v8 }
 0x4a8   :  { %v1444_v15 = vmax.f32 %v1440_v12, 0.0 }
 0x4a9   :  { %v1447_v17 = vmax.f32 %v1443_v4, 0.0 }
 0x4aa   :  { %v1448_v19 = vmin.f32 %v1444_v15, 1.0 }
 0x4ab   :  { %v1451_v20 = vmin.f32 %v1447_v17, 1.0  ;;  %v1370_v21 = vpop.f32.mrf.mxu3 }
 0x4ac   :  { %v1459_v22 = vsel %vm1458_vm12, %v1448_v19, %v1456_v18  ;;  %v1409_v23 = vpop.f32.mrf.mxu2 }
 0x4ad   :  { %1463 = vst [vmem:[%s2518_s14] sm:$0x77] %v1459_v22  ;;  %v1457_v25 = vrot.slane %v1451_v20, 4 }
 0x4af   :  { %v1460_v26 = vsel %vm1458_vm12, %v1450_v24, %v1457_v25 }
 0x4b0   :  { %1464 = vst [vmem:[%s2518_s14 + $0x8] sm:$0x77] %v1460_v26 }
 0x4b1   :  { %1469 = vsyncpa [#allocation3], 1 }
 0x4b2   :  { %1470 = vsyncpa [#allocation5], 1 }
 0x4b3   :  { %1471 = vsyncpa [#allocation8], 1 }
 0x4b4   :  { %1472 = vsyncpa [#allocation11], 1 }
 0x4b5   :  { %1473 = vsyncpa [#allocation14], 1 }

</bundles_post_ra>
